<compile_context>
chip_gen: v6e
topology: v6e:2x2x1
jax: 0.10.0
libtpu: 0.0.40
codegen_flags: <defaults>
</compile_context>

<pallas_src>
import functools

import jax
import jax.numpy as jnp
from jax.experimental import pallas as pl
from jax.experimental.pallas import tpu as pltpu


M_SPARSE = 8      # N:M group size (m); kept positions within each group: {0, 2}
V_TILE = 64       # row-padding multiple (module's padding(tensor, 64))
LANE_ALIGN = 128  # pad compacted feature dims to a lane multiple (256 can be
                  # marginally better for the 256-wide MXU on v6e/v7x; 128
                  # keeps padding overhead lowest and is always legal)


def _round_up(x, a):
    return (x + a - 1) // a * a


# ----------------------------------------------------------------------------
# 2:8 compaction helpers (static column pattern c % 8 in {0, 2})
# ----------------------------------------------------------------------------
def _compact_features(a):
    """Keep trailing-axis entries c with c % 8 in {0, 2}, preserving order."""
    *lead, f = a.shape
    a = a.reshape(*lead, f // M_SPARSE, M_SPARSE)
    return jnp.stack((a[..., 0], a[..., 2]), axis=-1).reshape(*lead, f // 4)


def _compact_rows(w):
    """Keep rows r with r % 8 in {0, 2}, preserving order."""
    o, i = w.shape
    w = w.reshape(o // M_SPARSE, M_SPARSE, i)
    return jnp.stack((w[:, 0, :], w[:, 2, :]), axis=1).reshape(o // 4, i)


def prepare_sp_minicpm_weights(w1, w3, w2, compute_dtype=jnp.bfloat16):
    """Init-time weight packing (mirrors SrnmSpmm.__init__ sparsification).

    w1, w3: (inter, hidden); w2: (hidden, inter).
    Returns pre-transposed, 2:8-compacted, zero-padded weights:
      w1t, w3t: (hidden_c_pad, inter_c_pad); w2t: (inter_c_pad, hidden)
    where hidden_c_pad/inter_c_pad are hidden/4, inter/4 rounded up to 128.
    Only intermediate channels with index % 8 in {0, 2} survive w2's mask, so
    w1/w3 rows for all other channels are dropped (their outputs are never
    used); zero padding contributes exactly 0 to every product.
    """
    inter, hidden = w1.shape
    assert hidden % M_SPARSE == 0 and inter % M_SPARSE == 0
    hidden_c, inter_c = hidden // 4, inter // 4
    hidden_c_pad = _round_up(hidden_c, LANE_ALIGN)
    inter_c_pad = _round_up(inter_c, LANE_ALIGN)

    w1_c = _compact_rows(_compact_features(w1)).astype(compute_dtype)  # (inter_c, hidden_c)
    w3_c = _compact_rows(_compact_features(w3)).astype(compute_dtype)
    w2_c = _compact_features(w2).astype(compute_dtype)                 # (hidden, inter_c)

    w1t = jnp.zeros((hidden_c_pad, inter_c_pad), compute_dtype).at[
        :hidden_c, :inter_c].set(w1_c.T)
    w3t = jnp.zeros((hidden_c_pad, inter_c_pad), compute_dtype).at[
        :hidden_c, :inter_c].set(w3_c.T)
    w2t = jnp.zeros((inter_c_pad, hidden), compute_dtype).at[
        :inter_c, :].set(w2_c.T)
    return w1t, w3t, w2t


# ----------------------------------------------------------------------------
# Kernels
# ----------------------------------------------------------------------------
def _mlp_kernel_resident(x_ref, w1t_ref, w3t_ref, w2t_ref, o_ref):
    """K == 1: full weights resident; write output directly (no accumulator)."""
    x = x_ref[...]
    g = jnp.dot(x, w1t_ref[...], preferred_element_type=jnp.float32)
    u = jnp.dot(x, w3t_ref[...], preferred_element_type=jnp.float32)
    h = (g * jax.nn.sigmoid(g)) * u                        # SiLU(g) * up, f32
    o_ref[...] = jnp.dot(h.astype(w2t_ref.dtype), w2t_ref[...],
                         preferred_element_type=jnp.float32).astype(o_ref.dtype)


def _mlp_kernel_ktiled(x_ref, w1t_ref, w3t_ref, w2t_ref, o_ref, acc_ref):
    """K > 1: reduce over intermediate tiles with an fp32 VMEM accumulator."""
    k = pl.program_id(1)
    x = x_ref[...]
    g = jnp.dot(x, w1t_ref[...], preferred_element_type=jnp.float32)
    u = jnp.dot(x, w3t_ref[...], preferred_element_type=jnp.float32)
    h = (g * jax.nn.sigmoid(g)) * u
    part = jnp.dot(h.astype(w2t_ref.dtype), w2t_ref[...],
                   preferred_element_type=jnp.float32)

    @pl.when(k == 0)
    def _():
        acc_ref[...] = part            # assign (skip zero-init round-trip)

    @pl.when(k > 0)
    def _():
        acc_ref[...] += part

    @pl.when(k == pl.num_programs(1) - 1)
    def _():
        o_ref[...] = acc_ref[...].astype(o_ref.dtype)


# ----------------------------------------------------------------------------
# Tile selection (bytes-budget driven, generation aware)
# ----------------------------------------------------------------------------
def _vmem_budget_bytes():
    """~75% of per-core VMEM; falls back to 48 MiB (safe for v7x's 64 MiB)."""
    try:
        info = pltpu.get_tpu_info()
        for name in ("vmem_capacity_bytes", "vmem_size_bytes", "vmem_bytes"):
            cap = getattr(info, name, None)
            if cap:
                return (int(cap) * 3) // 4
    except Exception:
        pass
    return 48 * 1024 * 1024


def _select_tiles(m_pad, hidden_c_pad, inter_c_pad, hidden,
                  w_itemsize, out_itemsize, budget):
    # Row tile: biggest of 256/128/64 that divides m_pad; then ensure >= 2 row
    # tiles when possible so both v7x TensorCores are busy at decode sizes
    # (on 1-TC chips the extra ~0.35us grid step is negligible).
    br = next((b for b in (256, 128, 64) if m_pad % b == 0), m_pad)
    if m_pad // br < 2 and br >= 16 and m_pad % (br // 2) == 0:
        br //= 2

    def footprint(bk):
        # Pallas double-buffers every blocked operand; weights with constant
        # index maps are DMA'd only once but still occupy 2 buffers.
        b = 2 * br * hidden_c_pad * w_itemsize            # x tile
        b += 2 * 2 * hidden_c_pad * bk * w_itemsize       # w1t + w3t tiles
        b += 2 * bk * hidden * w_itemsize                 # w2t tile
        b += 2 * br * hidden * out_itemsize               # out tile
        if bk < inter_c_pad:
            b += br * hidden * 4                          # fp32 accumulator
        return b

    # Prefer full residency (bk == inter_c_pad -> weights fetched once, no
    # accumulator); otherwise the largest 128-multiple divisor that fits.
    bk_candidates = sorted(
        (d for d in range(LANE_ALIGN, inter_c_pad + 1, LANE_ALIGN)
         if inter_c_pad % d == 0),
        reverse=True)
    bk = next((d for d in bk_candidates if footprint(d) <= budget),
              bk_candidates[-1])
    return br, bk


# ----------------------------------------------------------------------------
# Forward wrapper
# ----------------------------------------------------------------------------
@functools.partial(jax.jit, static_argnames=("block_rows", "block_k"))
def sp_minicpm_mlp(hidden_states, w1t, w3t, w2t, *,
                   block_rows=None, block_k=None):
    """hidden_states: (batch, hidden) fp32/bf16.  Weights from
    prepare_sp_minicpm_weights (compacted + padded + transposed, bf16)."""
    batch, hidden = hidden_states.shape
    hidden_c_pad, inter_c_pad = w1t.shape
    assert w3t.shape == (hidden_c_pad, inter_c_pad)
    assert w2t.shape == (inter_c_pad, hidden)
    out_dtype = hidden_states.dtype
    compute_dtype = w1t.dtype
    hidden_c = hidden // 4

    # Cast first (halves the gather/pad HBM traffic), then compact to the kept
    # 2-of-8 hidden columns, then zero-pad features to hidden_c_pad and rows
    # to a multiple of 64 (module's `padding(tensor, 64)`).
    x = _compact_features(hidden_states.astype(compute_dtype))
    pad_rows = (-batch) % V_TILE
    x = jnp.pad(x, ((0, pad_rows), (0, hidden_c_pad - hidden_c)))
    m_pad = batch + pad_rows

    budget = _vmem_budget_bytes()
    br, bk = _select_tiles(m_pad, hidden_c_pad, inter_c_pad, hidden,
                           jnp.dtype(compute_dtype).itemsize,
                           jnp.dtype(out_dtype).itemsize, budget)
    if block_rows is not None:
        br = block_rows
    if block_k is not None:
        bk = block_k
    # Divisibility checks (close the silent-drop hole for manual overrides).
    assert m_pad % br == 0 and (br % 8 == 0 or br == m_pad), (m_pad, br)
    assert inter_c_pad % bk == 0 and bk % LANE_ALIGN == 0, (inter_c_pad, bk)
    n_k = inter_c_pad // bk

    w_items = jnp.dtype(compute_dtype).itemsize
    cost = pl.CostEstimate(
        flops=4 * m_pad * hidden_c_pad * inter_c_pad
              + 2 * m_pad * inter_c_pad * hidden,
        transcendentals=m_pad * inter_c_pad,
        bytes_accessed=(x.size * w_items
                        + (w1t.size + w3t.size + w2t.size) * w_items
                        + m_pad * hidden * jnp.dtype(out_dtype).itemsize),
    )

    if n_k == 1:
        # Weights fully VMEM-resident: constant index maps -> fetched from HBM
        # exactly once, never re-streamed per row tile; no accumulator.
        grid_spec = pltpu.PrefetchScalarGridSpec(
            num_scalar_prefetch=0,
            grid=(m_pad // br,),
            in_specs=[
                pl.BlockSpec((br, hidden_c_pad), lambda i: (i, 0)),        # x
                pl.BlockSpec((hidden_c_pad, inter_c_pad), lambda i: (0, 0)),  # w1t
                pl.BlockSpec((hidden_c_pad, inter_c_pad), lambda i: (0, 0)),  # w3t
                pl.BlockSpec((inter_c_pad, hidden), lambda i: (0, 0)),     # w2t
            ],
            out_specs=pl.BlockSpec((br, hidden), lambda i: (i, 0)),
        )
        kernel = _mlp_kernel_resident
        dims = ("parallel",)
    else:
        # Large models: tile the compacted intermediate dim (reduction axis
        # last), fp32 accumulator in VMEM.
        grid_spec = pltpu.PrefetchScalarGridSpec(
            num_scalar_prefetch=0,
            grid=(m_pad // br, n_k),
            in_specs=[
                pl.BlockSpec((br, hidden_c_pad), lambda i, k: (i, 0)),     # x
                pl.BlockSpec((hidden_c_pad, bk), lambda i, k: (0, k)),     # w1t
                pl.BlockSpec((hidden_c_pad, bk), lambda i, k: (0, k)),     # w3t
                pl.BlockSpec((bk, hidden),       lambda i, k: (k, 0)),     # w2t
            ],
            out_specs=pl.BlockSpec((br, hidden), lambda i, k: (i, 0)),
            scratch_shapes=[pltpu.VMEM((br, hidden), jnp.float32)],
        )
        kernel = _mlp_kernel_ktiled
        dims = ("parallel", "arbitrary")

    out = pl.pallas_call(
        kernel,
        out_shape=jax.ShapeDtypeStruct((m_pad, hidden), out_dtype),
        grid_spec=grid_spec,
        compiler_params=pltpu.CompilerParams(
            dimension_semantics=dims,
            vmem_limit_bytes=int(budget),
        ),
        cost_estimate=cost,
    )(x, w1t, w3t, w2t)

    return out[:batch, :]


# ----------------------------------------------------------------------------
# References
# ----------------------------------------------------------------------------
def _reference_fp32(x, w1, w3, w2):
    """Pure fp32 reference of the PyTorch forward (dense-mask formulation)."""
    inter, hidden = w1.shape
    mask_h = ((jnp.arange(hidden) % 8 == 0) | (jnp.arange(hidden) % 8 == 2)
              ).astype(w1.dtype)
    mask_i = ((jnp.arange(inter) % 8 == 0) | (jnp.arange(inter) % 8 == 2)
              ).astype(w2.dtype)
    g = x @ (w1 * mask_h[None, :]).T
    u = x @ (w3 * mask_h[None, :]).T
    return (jax.nn.silu(g) * u) @ (w2 * mask_i[None, :]).T


def _reference_matched(x, w1t, w3t, w2t):
    """Same compaction + padding + bf16 cast + fp32 accumulation as the kernel."""
    hidden_c = x.shape[-1] // 4
    x_c = _compact_features(x.astype(w1t.dtype))
    x_c = jnp.pad(x_c, ((0, 0), (0, w1t.shape[0] - hidden_c)))
    g = jnp.dot(x_c, w1t, preferred_element_type=jnp.float32)
    u = jnp.dot(x_c, w3t, preferred_element_type=jnp.float32)
    h = (g * jax.nn.sigmoid(g)) * u
    return jnp.dot(h.astype(w2t.dtype), w2t,
                   preferred_element_type=jnp.float32).astype(x.dtype)


if __name__ == "__main__":
    key = jax.random.PRNGKey(0)

    def _make_case(key, batch, hidden_size, intermediate_size):
        kx, k1, k2, k3 = jax.random.split(key, 4)
        x = jax.random.normal(kx, (batch, hidden_size), dtype=jnp.float32)
        sh = 1.0 / jnp.sqrt(hidden_size)
        si = 1.0 / jnp.sqrt(intermediate_size)
        w1 = jax.random.normal(k1, (intermediate_size, hidden_size), jnp.float32) * sh
        w3 = jax.random.normal(k3, (intermediate_size, hidden_size), jnp.float32) * sh
        w2 = jax.random.normal(k2, (hidden_size, intermediate_size), jnp.float32) * si
        return x, w1, w3, w2

    # --- Case 1: small shapes, K == 1 fully-resident fast path ---------------
    x, w1, w3, w2 = _make_case(key, batch=2, hidden_size=128,
                               intermediate_size=256)
    # Init-time packing, done ONCE (matches the PyTorch module, which
    # sparsifies in __init__).  SrnmSpmm bias parameters are zeros -> no-op.
    w1t, w3t, w2t = prepare_sp_minicpm_weights(w1, w3, w2)
    out = jax.block_until_ready(sp_minicpm_mlp(x, w1t, w3t, w2t))
    assert out.shape == (2, 128), out.shape
    assert jnp.allclose(out, _reference_matched(x, w1t, w3t, w2t),
                        atol=5e-3, rtol=5e-3), "case1: mismatch vs matched ref"
    assert jnp.allclose(out, _reference_fp32(x, w1, w3, w2),
                        atol=5e-2, rtol=5e-2), "case1: mismatch vs fp32 ref"

    # --- Case 2: force the K-tiled reduction path (block_k override) ---------
    key2 = jax.random.PRNGKey(1)
    x2, w1b, w3b, w2b = _make_case(key2, batch=5, hidden_size=256,
                                   intermediate_size=1024)
    w1t2, w3t2, w2t2 = prepare_sp_minicpm_weights(w1b, w3b, w2b)
    out2 = jax.block_until_ready(sp_minicpm_mlp(x2, w1t2, w3t2, w2t2,
                                                block_k=128))
    assert out2.shape == (5, 256), out2.shape
    assert jnp.allclose(out2, _reference_matched(x2, w1t2, w3t2, w2t2),
                        atol=5e-3, rtol=5e-3), "case2: mismatch vs matched ref"
    assert jnp.allclose(out2, _reference_fp32(x2, w1b, w3b, w2b),
                        atol=5e-2, rtol=5e-2), "case2: mismatch vs fp32 ref"

    print("KERNEL_OK")
</pallas_src>

<mosaic_0001>
module attributes {stable_mosaic.version = 11 : i64} {
  func.func @_mlp_kernel_resident(%arg0: i32, %arg1: memref<32x128xbf16, #tpu.memory_space<vmem>>, %arg2: memref<128x128xbf16, #tpu.memory_space<vmem>>, %arg3: memref<128x128xbf16, #tpu.memory_space<vmem>>, %arg4: memref<128x128xbf16, #tpu.memory_space<vmem>>, %arg5: memref<32x128xf32, #tpu.memory_space<vmem>>) attributes {dimension_semantics = [#tpu.dimension_semantics<parallel>], iteration_bounds = array<i64: 2>, scalar_prefetch = 0 : i64, scratch_operands = 0 : i64, tpu.core_type = #tpu.core_type<tc>, window_params = [{transform_indices = @transform_0, window_bounds = array<i64: 32, 128>}, {pipeline_mode = #tpu.pipeline_mode<synchronous>, transform_indices = @transform_1, window_bounds = array<i64: 128, 128>}, {pipeline_mode = #tpu.pipeline_mode<synchronous>, transform_indices = @transform_2, window_bounds = array<i64: 128, 128>}, {pipeline_mode = #tpu.pipeline_mode<synchronous>, transform_indices = @transform_3, window_bounds = array<i64: 128, 128>}, {transform_indices = @transform_4, window_bounds = array<i64: 32, 128>}]} {
    %c0 = arith.constant 0 : index
    %c0_0 = arith.constant 0 : index
    %0 = vector.load %arg1[%c0, %c0_0] : memref<32x128xbf16, #tpu.memory_space<vmem>>, vector<32x128xbf16>
    %c0_1 = arith.constant 0 : index
    %c0_2 = arith.constant 0 : index
    %1 = vector.load %arg2[%c0_1, %c0_2] : memref<128x128xbf16, #tpu.memory_space<vmem>>, vector<128x128xbf16>
    %cst = arith.constant dense<0.000000e+00> : vector<32x128xf32>
    %2 = tpu.matmul %0, %1, %cst {dimension_numbers = #tpu.dot_dimension_numbers<[1], [0], [0], [1], [0, 0, 1, 1], [], []>} : vector<32x128xbf16>, vector<128x128xbf16>, vector<32x128xf32> -> vector<32x128xf32>
    %c0_3 = arith.constant 0 : index
    %c0_4 = arith.constant 0 : index
    %3 = vector.load %arg3[%c0_3, %c0_4] : memref<128x128xbf16, #tpu.memory_space<vmem>>, vector<128x128xbf16>
    %cst_5 = arith.constant dense<0.000000e+00> : vector<32x128xf32>
    %4 = tpu.matmul %0, %3, %cst_5 {dimension_numbers = #tpu.dot_dimension_numbers<[1], [0], [0], [1], [0, 0, 1, 1], [], []>} : vector<32x128xbf16>, vector<128x128xbf16>, vector<32x128xf32> -> vector<32x128xf32>
    %5 = arith.negf %2 : vector<32x128xf32>
    %6 = math.exp %5 : vector<32x128xf32>
    %cst_6 = arith.constant 1.000000e+00 : f32
    %7 = vector.broadcast %cst_6 : f32 to vector<32x128xf32>
    %8 = arith.addf %7, %6 : vector<32x128xf32>
    %9 = arith.divf %7, %8 : vector<32x128xf32>
    %10 = arith.mulf %2, %9 : vector<32x128xf32>
    %11 = arith.mulf %10, %4 : vector<32x128xf32>
    %12 = arith.truncf %11 : vector<32x128xf32> to vector<32x128xbf16>
    %c0_7 = arith.constant 0 : index
    %c0_8 = arith.constant 0 : index
    %13 = vector.load %arg4[%c0_7, %c0_8] : memref<128x128xbf16, #tpu.memory_space<vmem>>, vector<128x128xbf16>
    %cst_9 = arith.constant dense<0.000000e+00> : vector<32x128xf32>
    %14 = tpu.matmul %12, %13, %cst_9 {dimension_numbers = #tpu.dot_dimension_numbers<[1], [0], [0], [1], [0, 0, 1, 1], [], []>} : vector<32x128xbf16>, vector<128x128xbf16>, vector<32x128xf32> -> vector<32x128xf32>
    %c0_10 = arith.constant 0 : index
    %c0_11 = arith.constant 0 : index
    %15 = vector.load %arg5[%c0_10, %c0_11] : memref<32x128xf32, #tpu.memory_space<vmem>>, vector<32x128xf32>
    tpu.vector_store %arg5[%c0_10, %c0_11], %14 {strides = array<i32>} : memref<32x128xf32, #tpu.memory_space<vmem>>, vector<32x128xf32>,
    return
  }
  func.func @transform_0(%arg0: i32) -> (i32, i32) {
    %c0_i32 = arith.constant 0 : i32
    %c0_i32_0 = arith.constant 0 : i32
    return %arg0, %c0_i32 : i32, i32
  }
  func.func @transform_1(%arg0: i32) -> (i32, i32) {
    %c0_i32 = arith.constant 0 : i32
    %c0_i32_0 = arith.constant 0 : i32
    %c0_i32_1 = arith.constant 0 : i32
    return %c0_i32, %c0_i32_0 : i32, i32
  }
  func.func @transform_2(%arg0: i32) -> (i32, i32) {
    %c0_i32 = arith.constant 0 : i32
    %c0_i32_0 = arith.constant 0 : i32
    %c0_i32_1 = arith.constant 0 : i32
    return %c0_i32, %c0_i32_0 : i32, i32
  }
  func.func @transform_3(%arg0: i32) -> (i32, i32) {
    %c0_i32 = arith.constant 0 : i32
    %c0_i32_0 = arith.constant 0 : i32
    %c0_i32_1 = arith.constant 0 : i32
    return %c0_i32, %c0_i32_0 : i32, i32
  }
  func.func @transform_4(%arg0: i32) -> (i32, i32) {
    %c0_i32 = arith.constant 0 : i32
    %c0_i32_0 = arith.constant 0 : i32
    return %arg0, %c0_i32 : i32, i32
  }
}

</mosaic_0001>

<bundles_post_ra>
// kernel: sp_minicpm_mlp.1
= control target key start
LH: loop header
LB: loop body
LE: loop exit
PB: predicated region body
PF: predicated region fallthrough
CT: control target
= control target key end

     0   :  { %s865_s15 = smov 0   ;;  %s962_s0 = inlined_call_operand.vmem [shape: bf16[64,128], index: 0, kind: input, shape index: {}]   ;;  %s963_s1 = inlined_call_operand.vmem [shape: bf16[128,128], index: 1, kind: input, shape index: {}]   ;;  %s964_s2 = inlined_call_operand.vmem [shape: bf16[128,128], index: 2, kind: input, shape index: {}]   ;;  %s965_s3 = inlined_call_operand.vmem [shape: bf16[128,128], index: 3, kind: input, shape index: {}]   ;;  %s966_s4 = inlined_call_operand.vmem [shape: f32[64,128], index: 4, kind: output, shape index: {}]  }
   0x1 LB: > { %s651_s16 = sadd.s32 4294967295, %s838_s15   ;;  %p655_p0 = scmp.ge.s32.totalorder %s838_s15, 1  ;;  %s838_s15 = sphi %s865_s15, %s14_s15  }
   0x2   : > { %p163_p1 = scmp.lt.s32.totalorder %s838_s15, 3 }
   0x4   : > { %p164_p2 = pnand %p655_p0, %p163_p1 }
   0x5   : > { %s656_s19 = sshll.u32 (!%p164_p2), %s651_s16, 2 }
   0x6   : > { %167 = sbr.rel (%p164_p2) target bundleno = 482 (0x1e2), region = 36  ;;  %p190_p3 = scmp.lt.s32.totalorder (!%p164_p2), %s656_s19, 7 }
   0xb   : > { %v790_v0 = vld [vmem:[%s963_s1 + $0x38] sm:$0xff]   ;;  %v791_v1 = vld [vmem:[%s963_s1 + $0x30] sm:$0xff]   ;;  %s968_s19 = smov (!%p190_p3, %s656_s19), 7  ;;  %v792_v2 = vld [vmem:[%s963_s1 + $0x28] sm:$0xff]  }
   0xc   : > { %722 = vmatprep.subr.bf16.mxu0 %v790_v0  ;;  %s657_s24 = sshll.u32 %s968_s19, 2  ;;  %v793_v3 = vld [vmem:[%s963_s1 + $0x20] sm:$0xff]   ;;  %v798_v4 = vld [vmem:[%s964_s2 + $0x38] sm:$0xff]   ;;  %v801_v7 = vld [vmem:[%s964_s2 + $0x30] sm:$0xff]   ;;  %s659_s22 = sshll.u32 %s968_s19, 3 }
   0xd   : > { %723 = vmatpush3.bf16.msra.mxu0 %v790_v0  ;;  %s888_s27 = scalar_lea.vmem %s962_s0, %s657_s24  ;;  %v794_v6 = vld [vmem:[%s963_s1 + $0x18] sm:$0xff]   ;;  %742 = vmatprep.subr.bf16.mxu1 %v798_v4  ;;  %v802_v8 = vld [vmem:[%s964_s2 + $0x28] sm:$0xff]   ;;  %v795_v9 = vld [vmem:[%s963_s1 + $0x10] sm:$0xff]   ;;  %s199_s25 = scalar_lea.vmem %s966_s4, %s659_s22 }
   0xe   : > { %724 = vmatprep.subr.bf16.mxu0 %v791_v1  ;;  %v799_v5 = vld [vmem:[%s888_s27] sm:$0xff]   ;;  %743 = vmatpush3.bf16.msra.mxu1 %v798_v4  ;;  %v796_v11 = vld [vmem:[%s963_s1 + $0x8] sm:$0xff]   ;;  %v804_v12 = vld [vmem:[%s964_s2 + $0x18] sm:$0xff]  }
   0xf   : > { %738 = vmatprep.mubr.bf16.mxu0 %v799_v5  ;;  %744 = vmatprep.subr.bf16.mxu1 %v801_v7  ;;  %v803_v10 = vld [vmem:[%s964_s2 + $0x20] sm:$0xff]   ;;  %v805_v14 = vld [vmem:[%s964_s2 + $0x10] sm:$0xff]   ;;  %v806_v15 = vld [vmem:[%s964_s2 + $0x8] sm:$0xff]  }
  0x10   : > { %758 = vmatprep.mubr.bf16.mxu1 %v799_v5  ;;  %v797_v13 = vld [vmem:[%s963_s1] sm:$0xff]   ;;  %v800_v16 = vld [vmem:[%s888_s27 + $0x8] sm:$0xff]   ;;  %v808_v18 = vld [vmem:[%s965_s3 + $0x38] sm:$0xff]  }
  0x11   : > { %725 = vmatpush3.bf16.msra.mxu0 %v791_v1  ;;  %v807_v17 = vld [vmem:[%s964_s2] sm:$0xff]   ;;  %v809_v19 = vld [vmem:[%s965_s3 + $0x30] sm:$0xff]   ;;  %v810_v20 = vld [vmem:[%s965_s3 + $0x28] sm:$0xff]  }
  0x12   : > { %726 = vmatprep.subr.bf16.mxu0 %v792_v2  ;;  %745 = vmatpush3.bf16.msra.mxu1 %v801_v7  ;;  %v811_v21 = vld [vmem:[%s965_s3 + $0x20] sm:$0xff]   ;;  %v812_v22 = vld [vmem:[%s965_s3 + $0x18] sm:$0xff]   ;;  %v813_v23 = vld [vmem:[%s965_s3 + $0x10] sm:$0xff]  }
  0x13   : > { %746 = vmatprep.subr.bf16.mxu1 %v802_v8  ;;  %v814_v24 = vld [vmem:[%s965_s3 + $0x8] sm:$0xff]   ;;  %v815_v25 = vld [vmem:[%s965_s3] sm:$0xff]  }
  0x15   : > { %727 = vmatpush3.bf16.msra.mxu0 %v792_v2 }
  0x16   : > { %728 = vmatprep.subr.bf16.mxu0 %v793_v3  ;;  %747 = vmatpush3.bf16.msra.mxu1 %v802_v8 }
  0x17   : > { %748 = vmatprep.subr.bf16.mxu1 %v803_v10 }
  0x19   : > { %729 = vmatpush3.bf16.msra.mxu0 %v793_v3 }
  0x1a   : > { %730 = vmatprep.subr.bf16.mxu0 %v794_v6  ;;  %749 = vmatpush3.bf16.msra.mxu1 %v803_v10 }
  0x1b   : > { %750 = vmatprep.subr.bf16.mxu1 %v804_v12 }
  0x1d   : > { %731 = vmatpush3.bf16.msra.mxu0 %v794_v6 }
  0x1e   : > { %732 = vmatprep.subr.bf16.mxu0 %v795_v9  ;;  %751 = vmatpush3.bf16.msra.mxu1 %v804_v12 }
  0x1f   : > { %752 = vmatprep.subr.bf16.mxu1 %v805_v14 }
  0x21   : > { %733 = vmatpush3.bf16.msra.mxu0 %v795_v9 }
  0x22   : > { %734 = vmatprep.subr.bf16.mxu0 %v796_v11  ;;  %753 = vmatpush3.bf16.msra.mxu1 %v805_v14 }
  0x23   : > { %754 = vmatprep.subr.bf16.mxu1 %v806_v15 }
  0x25   : > { %735 = vmatpush3.bf16.msra.mxu0 %v796_v11 }
  0x26   : > { %736 = vmatprep.subr.bf16.mxu0 %v797_v13  ;;  %755 = vmatpush3.bf16.msra.mxu1 %v806_v15 }
  0x27   : > { %756 = vmatprep.subr.bf16.mxu1 %v807_v17 }
  0x29   : > { %737 = vmatpush3.bf16.msra.mxu0 %v797_v13 }
  0x2a   : > { %757 = vmatpush3.bf16.msra.mxu1 %v807_v17  ;;  %762 = vmatprep.subr.bf16.mxu0 %v808_v18 }
  0x2c   : > { %739 = vmatmul.mubr.bf16.vlgmr.msra.gmra.mxu0 %v800_v16 }
  0x2d   : > { %759 = vmatmul.mubr.bf16.vlgmr.msra.gmra.mxu1 %v800_v16  ;;  %763 = vmatpush3.bf16.msra.mxu0 %v808_v18 }
  0x2e   : > { %764 = vmatprep.subr.bf16.mxu0 %v809_v19 }
  0x31   : > { %765 = vmatpush3.bf16.msra.mxu0 %v809_v19 }
  0x32   : > { %766 = vmatprep.subr.bf16.mxu0 %v810_v20 }
  0x35   : > { %767 = vmatpush3.bf16.msra.mxu0 %v810_v20 }
  0x36   : > { %768 = vmatprep.subr.bf16.mxu0 %v811_v21 }
  0x39   : > { %769 = vmatpush3.bf16.msra.mxu0 %v811_v21 }
  0x3a   : > { %770 = vmatprep.subr.bf16.mxu0 %v812_v22 }
  0x3d   : > { %771 = vmatpush3.bf16.msra.mxu0 %v812_v22 }
  0x3e   : > { %772 = vmatprep.subr.bf16.mxu0 %v813_v23 }
  0x41   : > { %773 = vmatpush3.bf16.msra.mxu0 %v813_v23 }
  0x42   : > { %774 = vmatprep.subr.bf16.mxu0 %v814_v24 }
  0x45   : > { %775 = vmatpush3.bf16.msra.mxu0 %v814_v24 }
  0x46   : > { %776 = vmatprep.subr.bf16.mxu0 %v815_v25 }
  0x49   : > { %777 = vmatpush3.bf16.msra.mxu0 %v815_v25 }
  0xec   : > { %v740_v26 = vpop.f32.mrf.mxu0 }
  0xed   : > { %v680_v27 = vmul.f32 -1.442695, %v740_v26  ;;  %v760_v42 = vpop.f32.mrf.mxu1 }
  0xee   : > { %v316_v28 = vpop.f32.mrf.mxu0 }
  0xef   : > { %816 = vpow2.f32 %v680_v27  ;;  %v678_v29 = vmul.f32 -1.442695, %v316_v28  ;;  %v429_v43 = vpop.f32.mrf.mxu1 }
  0xf0   : > { %v741_v30 = vpop.f32.mrf.mxu0 }
  0xf1   : > { %818 = vpow2.f32 %v678_v29  ;;  %v681_v31 = vmul.f32 -1.442695, %v741_v30  ;;  %v761_v47 = vpop.f32.mrf.mxu1 }
  0xf2   : > { %v319_v32 = vpop.f32.mrf.mxu0 }
  0xf3   : > { %820 = vpow2.f32 %v681_v31  ;;  %v679_v33 = vmul.f32 -1.442695, %v319_v32  ;;  %v432_v54 = vpop.f32.mrf.mxu1 }
  0xf5   : > { %822 = vpow2.f32 %v679_v33 }
  0xfc   : > { %v817_v34 = vpop.eup %816 }
  0xfd   : > { %v458_v36 = vadd.f32 1.0, %v817_v34 }
  0xfe   : > { %v819_v35 = vpop.eup %818 }
  0xff   : > { %v456_v37 = vadd.f32 1.0, %v819_v35 }
 0x100   : > { %v821_v38 = vpop.eup %820 }
 0x101   : > { %824 = vrcp.f32 %v456_v37  ;;  %v459_v39 = vadd.f32 1.0, %v821_v38 }
 0x102   : > { %v823_v40 = vpop.eup %822  ;;  %826 = vrcp.f32 %v458_v36 }
 0x103   : > { %828 = vrcp.f32 %v459_v39  ;;  %v457_v41 = vadd.f32 1.0, %v823_v40 }
 0x105   : > { %830 = vrcp.f32 %v457_v41 }
 0x10e   : > { %v825_v44 = vpop.eup %824 }
 0x10f   : > { %v827_v45 = vpop.eup %826  ;;  %v468_v48 = vmul.f32 %v825_v44, %v316_v28 }
 0x110   : > { %v829_v46 = vpop.eup %828  ;;  %v470_v51 = vmul.f32 %v827_v45, %v740_v26 }
 0x111   : > { %v471_v49 = vmul.f32 %v829_v46, %v741_v30  ;;  %v472_v55 = vmul.f32 %v468_v48, %v429_v43 }
 0x112   : > { %v831_v50 = vpop.eup %830  ;;  %v474_v57 = vmul.f32 %v760_v42, %v470_v51 }
 0x113   : > { %v469_v52 = vmul.f32 %v831_v50, %v319_v32  ;;  %v475_v53 = vmul.f32 %v761_v47, %v471_v49 }
 0x115   : > { %v473_v56 = vmul.f32 %v469_v52, %v432_v54  ;;  %v477_v59 = vpack.c.bf16 %v475_v53, %v474_v57 }
 0x117   : > { %v476_v58 = vpack.c.bf16 %v473_v56, %v472_v55 }
 0x119   : > { %778 = vmatprep.mubr.bf16.mxu0 %v476_v58 }
 0x11a   : > { %779 = vmatmul.mubr.bf16.vlgmr.msra.gmra.mxu0 %v477_v59 }
 0x1da   : > { %v780_v60 = vpop.f32.mrf.mxu0 }
 0x1db   : > { %593 = vst [vmem:[%s199_s25 + $0x10] sm:$0xff] %v780_v60 }
 0x1dc   : > { %v576_v61 = vpop.f32.mrf.mxu0 }
 0x1dd   : > { %591 = vst [vmem:[%s199_s25] sm:$0xff] %v576_v61 }
 0x1de   : > { %v781_v62 = vpop.f32.mrf.mxu0 }
 0x1df   : > { %594 = vst [vmem:[%s199_s25 + $0x18] sm:$0xff] %v781_v62 }
 0x1e0   : > { %v579_v63 = vpop.f32.mrf.mxu0 }
 0x1e1   : > { %592 = vst [vmem:[%s199_s25 + $0x8] sm:$0xff] %v579_v63 }
 0x1e2 PF: > { %s14_s15 = sadd.s32 1, %s838_s15  }
 0x1e3   : > { %p11_p4 = scmp.ge.s32.totalorder %s14_s15, 4  }
 0x1e5   :  { %13 = sbr.rel (!%p11_p4) target bundleno = 1 (0x1), region = 66 }

</bundles_post_ra>
